<compile_context>
chip_gen: v7x
topology: tpu7x:2x2x1
jax: 0.10.0
libtpu: 0.0.40
codegen_flags: <defaults>
</compile_context>

<pallas_src>
import functools

import jax
import jax.numpy as jnp
from jax import lax
from jax.experimental import pallas as pl
from jax.experimental.pallas import tpu as pltpu


def _mha_kernel(num_heads, attn_dim, batch_block, seq_len,
                q_ref, k_ref, v_ref,
                wq_ref, bq_ref, wk_ref, bk_ref, wv_ref, bv_ref,
                wo_ref, bo_ref,
                o_ref):
    """One grid step handles `batch_block` batch elements (rows = batch_block*S).

    Ref shapes (VMEM tiles):
      q_ref/k_ref/v_ref : (batch_block*S, 8)
      wq/wk/wv          : (8, H*A)        bq/bk/bv : (1, H*A)
      wo                : (H, A, 8)       bo       : (1, 8)
      o_ref             : (batch_block*S, 8)
    """
    H, A, Bb, S = num_heads, attn_dim, batch_block, seq_len
    scale = 1.0 / (A ** 0.5)

    # Fused head projections: one MXU matmul per input instead of H tiny ones.
    Q = jnp.dot(q_ref[...], wq_ref[...], preferred_element_type=jnp.float32) + bq_ref[...]
    Q = Q * scale  # fold 1/sqrt(A) here (smaller tile than the per-head (S,S) scores)
    K = jnp.dot(k_ref[...], wk_ref[...], preferred_element_type=jnp.float32) + bk_ref[...]
    V = jnp.dot(v_ref[...], wv_ref[...], preferred_element_type=jnp.float32) + bv_ref[...]

    bo = bo_ref[...]  # (1, 8)

    # Static unroll over (batch, head): trip counts are tiny.
    for b in range(Bb):
        r0 = b * S
        acc = jnp.zeros((S, o_ref.shape[-1]), jnp.float32)
        for h in range(H):
            c0 = h * A
            qh = Q[r0:r0 + S, c0:c0 + A]          # (S, A)
            kh = K[r0:r0 + S, c0:c0 + A]          # (S, A)
            vh = V[r0:r0 + S, c0:c0 + A]          # (S, A)

            # q @ k^T without an explicit transpose (MXU handles it natively).
            s = lax.dot_general(qh, kh, (((1,), (1,)), ((), ())),
                                preferred_element_type=jnp.float32)   # (S, S)
            s = s - jnp.max(s, axis=-1, keepdims=True)
            p = jnp.exp(s)
            p = p * pl.reciprocal(jnp.sum(p, axis=-1, keepdims=True), approx=True)

            head = jnp.dot(p, vh, preferred_element_type=jnp.float32)  # (S, A)
            # Summed per-head output projection replaces the lane-axis concat.
            acc = acc + jnp.dot(head, wo_ref[h], preferred_element_type=jnp.float32)

        o_ref[r0:r0 + S, :] = (acc + bo).astype(o_ref.dtype)


def multi_head_attention(q, k, v, params, *, num_heads, attn_dim, batch_block=None):
    """q, k, v: [B, S, 8] float32.  Returns [B, S, 8].

    batch_block: batch elements per grid step.  Default B (single grid step,
    best on single-TensorCore v5e/v6e).  On v7x use pl.cdiv(B, 2) so the
    parallel grid shards across both TensorCores.
    """
    B, S, D = q.shape
    assert D == 8
    H, A = num_heads, attn_dim
    HA = H * A
    wq, bq, wk, bk, wv, bv, wo, bo = params

    if batch_block is None:
        batch_block = B
    assert B % batch_block == 0, "batch_block must divide batch"
    num_steps = B // batch_block
    rows_blk = batch_block * S

    # Fold batch into the row (sublane) axis so projections are single matmuls.
    q2 = q.reshape(B * S, D)
    k2 = k.reshape(B * S, D)
    v2 = v.reshape(B * S, D)

    kernel = functools.partial(_mha_kernel, H, A, batch_block, S)

    act_spec = pl.BlockSpec((rows_blk, D), lambda i: (i, 0))
    w_spec = pl.BlockSpec((D, HA), lambda i: (0, 0))
    b_spec = pl.BlockSpec((1, HA), lambda i: (0, 0))
    wo_spec = pl.BlockSpec((H, A, D), lambda i: (0, 0, 0))
    bo_spec = pl.BlockSpec((1, D), lambda i: (0, 0))

    out = pl.pallas_call(
        kernel,
        out_shape=jax.ShapeDtypeStruct((B * S, D), q.dtype),
        grid_spec=pltpu.PrefetchScalarGridSpec(
            num_scalar_prefetch=0,
            grid=(num_steps,),
            in_specs=[
                act_spec, act_spec, act_spec,      # q, k, v (rows-packed)
                w_spec, b_spec,                    # Wq, bq (heads packed on lanes)
                w_spec, b_spec,                    # Wk, bk
                w_spec, b_spec,                    # Wv, bv
                wo_spec, bo_spec,                  # Wo (H, A, D), bo
            ],
            out_specs=act_spec,
        ),
        compiler_params=pltpu.CompilerParams(
            dimension_semantics=("parallel",)),
    )(q2, k2, v2, wq, bq, wk, bk, wv, bv, wo, bo)

    return out.reshape(B, S, D)


def init_params(key, num_heads, attn_dim, d_model=8):
    """nn.Linear-style init U(-1/sqrt(fan_in), 1/sqrt(fan_in)), packed layout."""
    ks = jax.random.split(key, 8)
    H, A, D = num_heads, attn_dim, d_model
    lim_in = 1.0 / (D ** 0.5)
    lim_out = 1.0 / ((H * A) ** 0.5)

    def u(k, shape, lim):
        return jax.random.uniform(k, shape, jnp.float32, -lim, lim)

    wq = u(ks[0], (D, H * A), lim_in)    # heads packed along the out (lane) dim
    bq = u(ks[1], (1, H * A), lim_in)
    wk = u(ks[2], (D, H * A), lim_in)
    bk = u(ks[3], (1, H * A), lim_in)
    wv = u(ks[4], (D, H * A), lim_in)
    bv = u(ks[5], (1, H * A), lim_in)
    wo = u(ks[6], (H, A, D), lim_out)    # per-head slice of the (H*A, D) linear
    bo = u(ks[7], (1, D), lim_out)
    return (wq, bq, wk, bk, wv, bv, wo, bo)


def reference_mha(q, k, v, params, *, num_heads, attn_dim):
    """Pure-JAX reference mirroring the PyTorch module semantics (concat form)."""
    wq, bq, wk, bk, wv, bv, wo, bo = params
    H, A = num_heads, attn_dim
    Q = q @ wq + bq
    K = k @ wk + bk
    V = v @ wv + bv
    heads = []
    for h in range(H):
        qh = Q[..., h * A:(h + 1) * A]
        kh = K[..., h * A:(h + 1) * A]
        vh = V[..., h * A:(h + 1) * A]
        s = jnp.einsum("bsd,btd->bst", qh, kh) / (A ** 0.5)
        p = jax.nn.softmax(s, axis=-1)
        heads.append(jnp.einsum("bst,btd->bsd", p, vh))
    concat = jnp.concatenate(heads, axis=-1)
    wo_full = wo.reshape(H * A, -1)
    return concat @ wo_full + bo


if __name__ == "__main__":
    B, S, D = 2, 8, 8
    NUM_HEADS, ATTN_DIM = 2, 4

    root = jax.random.PRNGKey(0)
    kq, kk, kv, kp = jax.random.split(root, 4)
    q = jax.random.normal(kq, (B, S, D), jnp.float32)
    k = jax.random.normal(kk, (B, S, D), jnp.float32)
    v = jax.random.normal(kv, (B, S, D), jnp.float32)

    params = init_params(kp, NUM_HEADS, ATTN_DIM, D)

    out = multi_head_attention(q, k, v, params,
                               num_heads=NUM_HEADS, attn_dim=ATTN_DIM)
    out = jax.block_until_ready(out)

    ref = reference_mha(q, k, v, params, num_heads=NUM_HEADS, attn_dim=ATTN_DIM)
    assert out.shape == (B, S, D)
    # approx reciprocal in the softmax denominator is ~EUP precision (<< f32),
    # so the check tolerance is looser than 1e-5 but still meaningful.
    assert jnp.allclose(out, ref, atol=5e-3, rtol=5e-3), "mismatch vs reference"

    print("KERNEL_OK")
</pallas_src>

<mosaic_0001>
module attributes {stable_mosaic.version = 11 : i64} {
  func.func @_mha_kernel(%arg0: i32, %arg1: memref<16x8xf32, #tpu.memory_space<vmem>>, %arg2: memref<16x8xf32, #tpu.memory_space<vmem>>, %arg3: memref<16x8xf32, #tpu.memory_space<vmem>>, %arg4: memref<8x8xf32, #tpu.memory_space<vmem>>, %arg5: memref<1x8xf32, #tpu.memory_space<vmem>>, %arg6: memref<8x8xf32, #tpu.memory_space<vmem>>, %arg7: memref<1x8xf32, #tpu.memory_space<vmem>>, %arg8: memref<8x8xf32, #tpu.memory_space<vmem>>, %arg9: memref<1x8xf32, #tpu.memory_space<vmem>>, %arg10: memref<2x4x8xf32, #tpu.memory_space<vmem>>, %arg11: memref<1x8xf32, #tpu.memory_space<vmem>>, %arg12: memref<16x8xf32, #tpu.memory_space<vmem>>) attributes {dimension_semantics = [#tpu.dimension_semantics<parallel>], iteration_bounds = array<i64: 1>, scalar_prefetch = 0 : i64, scratch_operands = 0 : i64, tpu.core_type = #tpu.core_type<tc>, window_params = [{transform_indices = @transform_0, window_bounds = array<i64: 16, 8>}, {transform_indices = @transform_1, window_bounds = array<i64: 16, 8>}, {transform_indices = @transform_2, window_bounds = array<i64: 16, 8>}, {pipeline_mode = #tpu.pipeline_mode<synchronous>, transform_indices = @transform_3, window_bounds = array<i64: 8, 8>}, {pipeline_mode = #tpu.pipeline_mode<synchronous>, transform_indices = @transform_4, window_bounds = array<i64: 1, 8>}, {pipeline_mode = #tpu.pipeline_mode<synchronous>, transform_indices = @transform_5, window_bounds = array<i64: 8, 8>}, {pipeline_mode = #tpu.pipeline_mode<synchronous>, transform_indices = @transform_6, window_bounds = array<i64: 1, 8>}, {pipeline_mode = #tpu.pipeline_mode<synchronous>, transform_indices = @transform_7, window_bounds = array<i64: 8, 8>}, {pipeline_mode = #tpu.pipeline_mode<synchronous>, transform_indices = @transform_8, window_bounds = array<i64: 1, 8>}, {pipeline_mode = #tpu.pipeline_mode<synchronous>, transform_indices = @transform_9, window_bounds = array<i64: 2, 4, 8>}, {pipeline_mode = #tpu.pipeline_mode<synchronous>, transform_indices = @transform_10, window_bounds = array<i64: 1, 8>}, {transform_indices = @transform_11, window_bounds = array<i64: 16, 8>}]} {
    %c0 = arith.constant 0 : index
    %c0_0 = arith.constant 0 : index
    %0 = vector.load %arg1[%c0, %c0_0] : memref<16x8xf32, #tpu.memory_space<vmem>>, vector<16x8xf32>
    %c0_1 = arith.constant 0 : index
    %c0_2 = arith.constant 0 : index
    %1 = vector.load %arg4[%c0_1, %c0_2] : memref<8x8xf32, #tpu.memory_space<vmem>>, vector<8x8xf32>
    %cst = arith.constant dense<0.000000e+00> : vector<16x8xf32>
    %2 = tpu.matmul %0, %1, %cst {dimension_numbers = #tpu.dot_dimension_numbers<[1], [0], [0], [1], [0, 0, 1, 1], [], []>} : vector<16x8xf32>, vector<8x8xf32>, vector<16x8xf32> -> vector<16x8xf32>
    %c0_3 = arith.constant 0 : index
    %c0_4 = arith.constant 0 : index
    %3 = vector.load %arg5[%c0_3, %c0_4] : memref<1x8xf32, #tpu.memory_space<vmem>>, vector<1x8xf32>
    %4 = vector.broadcast %3 : vector<1x8xf32> to vector<16x8xf32>
    %5 = arith.addf %2, %4 : vector<16x8xf32>
    %cst_5 = arith.constant 5.000000e-01 : f32
    %6 = vector.broadcast %cst_5 : f32 to vector<16x8xf32>
    %7 = arith.mulf %5, %6 : vector<16x8xf32>
    %c0_6 = arith.constant 0 : index
    %c0_7 = arith.constant 0 : index
    %8 = vector.load %arg2[%c0_6, %c0_7] : memref<16x8xf32, #tpu.memory_space<vmem>>, vector<16x8xf32>
    %c0_8 = arith.constant 0 : index
    %c0_9 = arith.constant 0 : index
    %9 = vector.load %arg6[%c0_8, %c0_9] : memref<8x8xf32, #tpu.memory_space<vmem>>, vector<8x8xf32>
    %cst_10 = arith.constant dense<0.000000e+00> : vector<16x8xf32>
    %10 = tpu.matmul %8, %9, %cst_10 {dimension_numbers = #tpu.dot_dimension_numbers<[1], [0], [0], [1], [0, 0, 1, 1], [], []>} : vector<16x8xf32>, vector<8x8xf32>, vector<16x8xf32> -> vector<16x8xf32>
    %c0_11 = arith.constant 0 : index
    %c0_12 = arith.constant 0 : index
    %11 = vector.load %arg7[%c0_11, %c0_12] : memref<1x8xf32, #tpu.memory_space<vmem>>, vector<1x8xf32>
    %12 = vector.broadcast %11 : vector<1x8xf32> to vector<16x8xf32>
    %13 = arith.addf %10, %12 : vector<16x8xf32>
    %c0_13 = arith.constant 0 : index
    %c0_14 = arith.constant 0 : index
    %14 = vector.load %arg3[%c0_13, %c0_14] : memref<16x8xf32, #tpu.memory_space<vmem>>, vector<16x8xf32>
    %c0_15 = arith.constant 0 : index
    %c0_16 = arith.constant 0 : index
    %15 = vector.load %arg8[%c0_15, %c0_16] : memref<8x8xf32, #tpu.memory_space<vmem>>, vector<8x8xf32>
    %cst_17 = arith.constant dense<0.000000e+00> : vector<16x8xf32>
    %16 = tpu.matmul %14, %15, %cst_17 {dimension_numbers = #tpu.dot_dimension_numbers<[1], [0], [0], [1], [0, 0, 1, 1], [], []>} : vector<16x8xf32>, vector<8x8xf32>, vector<16x8xf32> -> vector<16x8xf32>
    %c0_18 = arith.constant 0 : index
    %c0_19 = arith.constant 0 : index
    %17 = vector.load %arg9[%c0_18, %c0_19] : memref<1x8xf32, #tpu.memory_space<vmem>>, vector<1x8xf32>
    %18 = vector.broadcast %17 : vector<1x8xf32> to vector<16x8xf32>
    %19 = arith.addf %16, %18 : vector<16x8xf32>
    %c0_20 = arith.constant 0 : index
    %c0_21 = arith.constant 0 : index
    %20 = vector.load %arg11[%c0_20, %c0_21] : memref<1x8xf32, #tpu.memory_space<vmem>>, vector<1x8xf32>
    %cst_22 = arith.constant 0.000000e+00 : f32
    %21 = vector.broadcast %cst_22 : f32 to vector<8x8xf32>
    %22 = vector.extract_strided_slice %7 {offsets = [0, 0], sizes = [8, 4], strides = [1, 1]} : vector<16x8xf32> to vector<8x4xf32>
    %23 = vector.extract_strided_slice %13 {offsets = [0, 0], sizes = [8, 4], strides = [1, 1]} : vector<16x8xf32> to vector<8x4xf32>
    %24 = vector.extract_strided_slice %19 {offsets = [0, 0], sizes = [8, 4], strides = [1, 1]} : vector<16x8xf32> to vector<8x4xf32>
    %cst_23 = arith.constant dense<0.000000e+00> : vector<8x8xf32>
    %25 = tpu.matmul %22, %23, %cst_23 {dimension_numbers = #tpu.dot_dimension_numbers<[1], [1], [0], [0], [0, 0, 1, 0], [], []>} : vector<8x4xf32>, vector<8x4xf32>, vector<8x8xf32> -> vector<8x8xf32>
    %cst_24 = arith.constant dense<0xFF800000> : vector<8xf32>
    %26 = vector.multi_reduction <maximumf>, %25, %cst_24 [1] : vector<8x8xf32> to vector<8xf32>
    %27 = vector.shape_cast %26 : vector<8xf32> to vector<8x1xf32>
    %28 = vector.broadcast %27 : vector<8x1xf32> to vector<8x8xf32>
    %29 = arith.subf %25, %28 : vector<8x8xf32>
    %30 = math.exp %29 : vector<8x8xf32>
    %cst_25 = arith.constant dense<0.000000e+00> : vector<8xf32>
    %31 = vector.multi_reduction <add>, %30, %cst_25 [1] : vector<8x8xf32> to vector<8xf32>
    %32 = vector.shape_cast %31 : vector<8xf32> to vector<8x1xf32>
    %33 = tpu.reciprocal %32 {approx = true} : vector<8x1xf32> -> vector<8x1xf32>
    %34 = vector.broadcast %33 : vector<8x1xf32> to vector<8x8xf32>
    %35 = arith.mulf %30, %34 : vector<8x8xf32>
    %cst_26 = arith.constant dense<0.000000e+00> : vector<8x4xf32>
    %36 = tpu.matmul %35, %24, %cst_26 {dimension_numbers = #tpu.dot_dimension_numbers<[1], [0], [0], [1], [0, 0, 1, 1], [], []>} : vector<8x8xf32>, vector<8x4xf32>, vector<8x4xf32> -> vector<8x4xf32>
    %c0_27 = arith.constant 0 : index
    %c0_28 = arith.constant 0 : index
    %c0_29 = arith.constant 0 : index
    %37 = vector.load %arg10[%c0_27, %c0_28, %c0_29] : memref<2x4x8xf32, #tpu.memory_space<vmem>>, vector<1x4x8xf32>
    %38 = vector.shape_cast %37 : vector<1x4x8xf32> to vector<4x8xf32>
    %cst_30 = arith.constant dense<0.000000e+00> : vector<8x8xf32>
    %39 = tpu.matmul %36, %38, %cst_30 {dimension_numbers = #tpu.dot_dimension_numbers<[1], [0], [0], [1], [0, 0, 1, 1], [], []>} : vector<8x4xf32>, vector<4x8xf32>, vector<8x8xf32> -> vector<8x8xf32>
    %40 = arith.addf %21, %39 : vector<8x8xf32>
    %41 = vector.extract_strided_slice %7 {offsets = [0, 4], sizes = [8, 4], strides = [1, 1]} : vector<16x8xf32> to vector<8x4xf32>
    %42 = vector.extract_strided_slice %13 {offsets = [0, 4], sizes = [8, 4], strides = [1, 1]} : vector<16x8xf32> to vector<8x4xf32>
    %43 = vector.extract_strided_slice %19 {offsets = [0, 4], sizes = [8, 4], strides = [1, 1]} : vector<16x8xf32> to vector<8x4xf32>
    %cst_31 = arith.constant dense<0.000000e+00> : vector<8x8xf32>
    %44 = tpu.matmul %41, %42, %cst_31 {dimension_numbers = #tpu.dot_dimension_numbers<[1], [1], [0], [0], [0, 0, 1, 0], [], []>} : vector<8x4xf32>, vector<8x4xf32>, vector<8x8xf32> -> vector<8x8xf32>
    %cst_32 = arith.constant dense<0xFF800000> : vector<8xf32>
    %45 = vector.multi_reduction <maximumf>, %44, %cst_32 [1] : vector<8x8xf32> to vector<8xf32>
    %46 = vector.shape_cast %45 : vector<8xf32> to vector<8x1xf32>
    %47 = vector.broadcast %46 : vector<8x1xf32> to vector<8x8xf32>
    %48 = arith.subf %44, %47 : vector<8x8xf32>
    %49 = math.exp %48 : vector<8x8xf32>
    %cst_33 = arith.constant dense<0.000000e+00> : vector<8xf32>
    %50 = vector.multi_reduction <add>, %49, %cst_33 [1] : vector<8x8xf32> to vector<8xf32>
    %51 = vector.shape_cast %50 : vector<8xf32> to vector<8x1xf32>
    %52 = tpu.reciprocal %51 {approx = true} : vector<8x1xf32> -> vector<8x1xf32>
    %53 = vector.broadcast %52 : vector<8x1xf32> to vector<8x8xf32>
    %54 = arith.mulf %49, %53 : vector<8x8xf32>
    %cst_34 = arith.constant dense<0.000000e+00> : vector<8x4xf32>
    %55 = tpu.matmul %54, %43, %cst_34 {dimension_numbers = #tpu.dot_dimension_numbers<[1], [0], [0], [1], [0, 0, 1, 1], [], []>} : vector<8x8xf32>, vector<8x4xf32>, vector<8x4xf32> -> vector<8x4xf32>
    %c1 = arith.constant 1 : index
    %c0_35 = arith.constant 0 : index
    %c0_36 = arith.constant 0 : index
    %56 = vector.load %arg10[%c1, %c0_35, %c0_36] : memref<2x4x8xf32, #tpu.memory_space<vmem>>, vector<1x4x8xf32>
    %57 = vector.shape_cast %56 : vector<1x4x8xf32> to vector<4x8xf32>
    %cst_37 = arith.constant dense<0.000000e+00> : vector<8x8xf32>
    %58 = tpu.matmul %55, %57, %cst_37 {dimension_numbers = #tpu.dot_dimension_numbers<[1], [0], [0], [1], [0, 0, 1, 1], [], []>} : vector<8x4xf32>, vector<4x8xf32>, vector<8x8xf32> -> vector<8x8xf32>
    %59 = arith.addf %40, %58 : vector<8x8xf32>
    %60 = vector.broadcast %20 : vector<1x8xf32> to vector<8x8xf32>
    %61 = arith.addf %59, %60 : vector<8x8xf32>
    %c0_38 = arith.constant 0 : index
    %c0_39 = arith.constant 0 : index
    %62 = vector.load %arg12[%c0_38, %c0_39] : memref<16x8xf32, #tpu.memory_space<vmem>>, vector<8x8xf32>
    tpu.vector_store %arg12[%c0_38, %c0_39], %61 {strides = array<i32>} : memref<16x8xf32, #tpu.memory_space<vmem>>, vector<8x8xf32>,
    %cst_40 = arith.constant 0.000000e+00 : f32
    %63 = vector.broadcast %cst_40 : f32 to vector<8x8xf32>
    %64 = vector.extract_strided_slice %7 {offsets = [8, 0], sizes = [8, 4], strides = [1, 1]} : vector<16x8xf32> to vector<8x4xf32>
    %65 = vector.extract_strided_slice %13 {offsets = [8, 0], sizes = [8, 4], strides = [1, 1]} : vector<16x8xf32> to vector<8x4xf32>
    %66 = vector.extract_strided_slice %19 {offsets = [8, 0], sizes = [8, 4], strides = [1, 1]} : vector<16x8xf32> to vector<8x4xf32>
    %cst_41 = arith.constant dense<0.000000e+00> : vector<8x8xf32>
    %67 = tpu.matmul %64, %65, %cst_41 {dimension_numbers = #tpu.dot_dimension_numbers<[1], [1], [0], [0], [0, 0, 1, 0], [], []>} : vector<8x4xf32>, vector<8x4xf32>, vector<8x8xf32> -> vector<8x8xf32>
    %cst_42 = arith.constant dense<0xFF800000> : vector<8xf32>
    %68 = vector.multi_reduction <maximumf>, %67, %cst_42 [1] : vector<8x8xf32> to vector<8xf32>
    %69 = vector.shape_cast %68 : vector<8xf32> to vector<8x1xf32>
    %70 = vector.broadcast %69 : vector<8x1xf32> to vector<8x8xf32>
    %71 = arith.subf %67, %70 : vector<8x8xf32>
    %72 = math.exp %71 : vector<8x8xf32>
    %cst_43 = arith.constant dense<0.000000e+00> : vector<8xf32>
    %73 = vector.multi_reduction <add>, %72, %cst_43 [1] : vector<8x8xf32> to vector<8xf32>
    %74 = vector.shape_cast %73 : vector<8xf32> to vector<8x1xf32>
    %75 = tpu.reciprocal %74 {approx = true} : vector<8x1xf32> -> vector<8x1xf32>
    %76 = vector.broadcast %75 : vector<8x1xf32> to vector<8x8xf32>
    %77 = arith.mulf %72, %76 : vector<8x8xf32>
    %cst_44 = arith.constant dense<0.000000e+00> : vector<8x4xf32>
    %78 = tpu.matmul %77, %66, %cst_44 {dimension_numbers = #tpu.dot_dimension_numbers<[1], [0], [0], [1], [0, 0, 1, 1], [], []>} : vector<8x8xf32>, vector<8x4xf32>, vector<8x4xf32> -> vector<8x4xf32>
    %c0_45 = arith.constant 0 : index
    %c0_46 = arith.constant 0 : index
    %c0_47 = arith.constant 0 : index
    %79 = vector.load %arg10[%c0_45, %c0_46, %c0_47] : memref<2x4x8xf32, #tpu.memory_space<vmem>>, vector<1x4x8xf32>
    %80 = vector.shape_cast %79 : vector<1x4x8xf32> to vector<4x8xf32>
    %cst_48 = arith.constant dense<0.000000e+00> : vector<8x8xf32>
    %81 = tpu.matmul %78, %80, %cst_48 {dimension_numbers = #tpu.dot_dimension_numbers<[1], [0], [0], [1], [0, 0, 1, 1], [], []>} : vector<8x4xf32>, vector<4x8xf32>, vector<8x8xf32> -> vector<8x8xf32>
    %82 = arith.addf %63, %81 : vector<8x8xf32>
    %83 = vector.extract_strided_slice %7 {offsets = [8, 4], sizes = [8, 4], strides = [1, 1]} : vector<16x8xf32> to vector<8x4xf32>
    %84 = vector.extract_strided_slice %13 {offsets = [8, 4], sizes = [8, 4], strides = [1, 1]} : vector<16x8xf32> to vector<8x4xf32>
    %85 = vector.extract_strided_slice %19 {offsets = [8, 4], sizes = [8, 4], strides = [1, 1]} : vector<16x8xf32> to vector<8x4xf32>
    %cst_49 = arith.constant dense<0.000000e+00> : vector<8x8xf32>
    %86 = tpu.matmul %83, %84, %cst_49 {dimension_numbers = #tpu.dot_dimension_numbers<[1], [1], [0], [0], [0, 0, 1, 0], [], []>} : vector<8x4xf32>, vector<8x4xf32>, vector<8x8xf32> -> vector<8x8xf32>
    %cst_50 = arith.constant dense<0xFF800000> : vector<8xf32>
    %87 = vector.multi_reduction <maximumf>, %86, %cst_50 [1] : vector<8x8xf32> to vector<8xf32>
    %88 = vector.shape_cast %87 : vector<8xf32> to vector<8x1xf32>
    %89 = vector.broadcast %88 : vector<8x1xf32> to vector<8x8xf32>
    %90 = arith.subf %86, %89 : vector<8x8xf32>
    %91 = math.exp %90 : vector<8x8xf32>
    %cst_51 = arith.constant dense<0.000000e+00> : vector<8xf32>
    %92 = vector.multi_reduction <add>, %91, %cst_51 [1] : vector<8x8xf32> to vector<8xf32>
    %93 = vector.shape_cast %92 : vector<8xf32> to vector<8x1xf32>
    %94 = tpu.reciprocal %93 {approx = true} : vector<8x1xf32> -> vector<8x1xf32>
    %95 = vector.broadcast %94 : vector<8x1xf32> to vector<8x8xf32>
    %96 = arith.mulf %91, %95 : vector<8x8xf32>
    %cst_52 = arith.constant dense<0.000000e+00> : vector<8x4xf32>
    %97 = tpu.matmul %96, %85, %cst_52 {dimension_numbers = #tpu.dot_dimension_numbers<[1], [0], [0], [1], [0, 0, 1, 1], [], []>} : vector<8x8xf32>, vector<8x4xf32>, vector<8x4xf32> -> vector<8x4xf32>
    %c1_53 = arith.constant 1 : index
    %c0_54 = arith.constant 0 : index
    %c0_55 = arith.constant 0 : index
    %98 = vector.load %arg10[%c1_53, %c0_54, %c0_55] : memref<2x4x8xf32, #tpu.memory_space<vmem>>, vector<1x4x8xf32>
    %99 = vector.shape_cast %98 : vector<1x4x8xf32> to vector<4x8xf32>
    %cst_56 = arith.constant dense<0.000000e+00> : vector<8x8xf32>
    %100 = tpu.matmul %97, %99, %cst_56 {dimension_numbers = #tpu.dot_dimension_numbers<[1], [0], [0], [1], [0, 0, 1, 1], [], []>} : vector<8x4xf32>, vector<4x8xf32>, vector<8x8xf32> -> vector<8x8xf32>
    %101 = arith.addf %82, %100 : vector<8x8xf32>
    %102 = vector.broadcast %20 : vector<1x8xf32> to vector<8x8xf32>
    %103 = arith.addf %101, %102 : vector<8x8xf32>
    %c8 = arith.constant 8 : index
    %c0_57 = arith.constant 0 : index
    %104 = vector.load %arg12[%c8, %c0_57] : memref<16x8xf32, #tpu.memory_space<vmem>>, vector<8x8xf32>
    tpu.vector_store %arg12[%c8, %c0_57], %103 {strides = array<i32>} : memref<16x8xf32, #tpu.memory_space<vmem>>, vector<8x8xf32>,
    return
  }
  func.func @transform_0(%arg0: i32) -> (i32, i32) {
    %c0_i32 = arith.constant 0 : i32
    %c0_i32_0 = arith.constant 0 : i32
    return %arg0, %c0_i32 : i32, i32
  }
  func.func @transform_1(%arg0: i32) -> (i32, i32) {
    %c0_i32 = arith.constant 0 : i32
    %c0_i32_0 = arith.constant 0 : i32
    return %arg0, %c0_i32 : i32, i32
  }
  func.func @transform_2(%arg0: i32) -> (i32, i32) {
    %c0_i32 = arith.constant 0 : i32
    %c0_i32_0 = arith.constant 0 : i32
    return %arg0, %c0_i32 : i32, i32
  }
  func.func @transform_3(%arg0: i32) -> (i32, i32) {
    %c0_i32 = arith.constant 0 : i32
    %c0_i32_0 = arith.constant 0 : i32
    %c0_i32_1 = arith.constant 0 : i32
    return %c0_i32, %c0_i32_0 : i32, i32
  }
  func.func @transform_4(%arg0: i32) -> (i32, i32) {
    %c0_i32 = arith.constant 0 : i32
    %c0_i32_0 = arith.constant 0 : i32
    %c0_i32_1 = arith.constant 0 : i32
    return %c0_i32, %c0_i32_0 : i32, i32
  }
  func.func @transform_5(%arg0: i32) -> (i32, i32) {
    %c0_i32 = arith.constant 0 : i32
    %c0_i32_0 = arith.constant 0 : i32
    %c0_i32_1 = arith.constant 0 : i32
    return %c0_i32, %c0_i32_0 : i32, i32
  }
  func.func @transform_6(%arg0: i32) -> (i32, i32) {
    %c0_i32 = arith.constant 0 : i32
    %c0_i32_0 = arith.constant 0 : i32
    %c0_i32_1 = arith.constant 0 : i32
    return %c0_i32, %c0_i32_0 : i32, i32
  }
  func.func @transform_7(%arg0: i32) -> (i32, i32) {
    %c0_i32 = arith.constant 0 : i32
    %c0_i32_0 = arith.constant 0 : i32
    %c0_i32_1 = arith.constant 0 : i32
    return %c0_i32, %c0_i32_0 : i32, i32
  }
  func.func @transform_8(%arg0: i32) -> (i32, i32) {
    %c0_i32 = arith.constant 0 : i32
    %c0_i32_0 = arith.constant 0 : i32
    %c0_i32_1 = arith.constant 0 : i32
    return %c0_i32, %c0_i32_0 : i32, i32
  }
  func.func @transform_9(%arg0: i32) -> (i32, i32, i32) {
    %c0_i32 = arith.constant 0 : i32
    %c0_i32_0 = arith.constant 0 : i32
    %c0_i32_1 = arith.constant 0 : i32
    %c0_i32_2 = arith.constant 0 : i32
    return %c0_i32, %c0_i32_0, %c0_i32_1 : i32, i32, i32
  }
  func.func @transform_10(%arg0: i32) -> (i32, i32) {
    %c0_i32 = arith.constant 0 : i32
    %c0_i32_0 = arith.constant 0 : i32
    %c0_i32_1 = arith.constant 0 : i32
    return %c0_i32, %c0_i32_0 : i32, i32
  }
  func.func @transform_11(%arg0: i32) -> (i32, i32) {
    %c0_i32 = arith.constant 0 : i32
    %c0_i32_0 = arith.constant 0 : i32
    return %arg0, %c0_i32 : i32, i32
  }
}

</mosaic_0001>

<bundles_post_ra>
// kernel: tpu_custom_call.1
= control target key start
LH: loop header
LB: loop body
LE: loop exit
PB: predicated region body
PF: predicated region fallthrough
CT: control target
= control target key end

     0   :  { %vm48_vm0 = vcmask 64512   ;;  %v1451_v6 = vmov 0.0   ;;  %vm1452_vm1 = vmmov 0   ;;  %vm315_vm2 = vcmask 31744   ;;  %s1453_s29 = smov 124   ;;  %s1657_s5 = inlined_call_operand.vmem [shape: f32[8,8], index: 5, kind: input, shape index: {}]   ;;  %s1658_s3 = inlined_call_operand.vmem [shape: f32[8,8], index: 3, kind: input, shape index: {}]   ;;  %s1659_s1 = inlined_call_operand.vmem [shape: f32[16,8], index: 1, kind: input, shape index: {}]   ;;  %s1660_s0 = inlined_call_operand.vmem [shape: f32[16,8], index: 0, kind: input, shape index: {}]   ;;  %s1661_s6 = inlined_call_operand.vmem [shape: f32[1,8], index: 6, kind: input, shape index: {}]   ;;  %s1662_s4 = inlined_call_operand.vmem [shape: f32[1,8], index: 4, kind: input, shape index: {}]   ;;  %s1663_s7 = inlined_call_operand.vmem [shape: f32[8,8], index: 7, kind: input, shape index: {}]   ;;  %s1664_s2 = inlined_call_operand.vmem [shape: f32[16,8], index: 2, kind: input, shape index: {}]   ;;  %s1665_s8 = inlined_call_operand.vmem [shape: f32[1,8], index: 8, kind: input, shape index: {}]   ;;  %s1666_s9 = inlined_call_operand.vmem [shape: f32[2,4,8], index: 9, kind: input, shape index: {}]   ;;  %s1667_s10 = inlined_call_operand.vmem [shape: f32[1,8], index: 10, kind: input, shape index: {}]   ;;  %s1668_s11 = inlined_call_operand.vmem [shape: f32[16,8], index: 11, kind: output, shape index: {}]  }
   0x1   :  { %v134_v0 = vld [vmem:[%s1657_s5] sm:$0xff]  ;;  %v133_v3 = vld [vmem:[%s1659_s1 + $0x8] sm:$0xff]  ;;  %vm648_vm3 = vcmask 1043456  }
   0x2   :  { %v40_v1 = vld [vmem:[%s1658_s3] sm:$0xff]  ;;  %1362 = vmatprep.subr.mxu1 %v134_v0  ;;  %v39_v5 = vld [vmem:[%s1660_s0 + $0x8] sm:$0xff] }
   0x3   :  { %v132_v2 = vld [vmem:[%s1659_s1] sm:$0xff]  ;;  %1357 = vmatprep.subr.mxu0 %v40_v1  ;;  %1363 = vmatpush3.msra.mxu1 %v134_v0  ;;  %v224_v20 = vld [vmem:[%s1664_s2 + $0x8] sm:$0xff] }
   0x4   :  { %v38_v4 = vld [vmem:[%s1660_s0] sm:$0xff]  ;;  %1364 = vmatprep.mubr.msk.f32.mxu1 %vm48_vm0, %v132_v2  ;;  %1358 = vmatpush3.msra.mxu0 %v40_v1 }
   0x5   :  { %1359 = vmatprep.mubr.msk.f32.mxu0 %vm48_vm0, %v38_v4  ;;  %1365 = vmatmul.mubr.msk.f32.vlgmr.msra.gmra.mrb[0].mxu1 %vm48_vm0, %v133_v3  ;;  %v1295_v7 = vld [vmem:[%s1661_s6] ss:$0 sm:$0xff]  ;;  %v1307_v48 = vld [vmem:[%s1666_s9 + $0x4] sm:$0xf] }
   0x6   :  { %1360 = vmatmul.mubr.msk.f32.vlgmr.msra.gmra.mrb[0].mxu0 %vm48_vm0, %v39_v5  ;;  %1372 = vmatprep.subr.mxu1 %v1451_v6  ;;  %v1292_v8 = vld [vmem:[%s1662_s4] ss:$0 sm:$0xff] }
   0x7   :  { %1374 = vmatprep.mubr.msk.f32.mxu1 %vm1452_vm1, %v1451_v6  ;;  %v225_v18 = vld [vmem:[%s1663_s7] sm:$0xff] }
   0x8   :  { %v223_v19 = vld [vmem:[%s1664_s2] sm:$0xff]  ;;  %1367 = vmatprep.subr.mxu0 %v225_v18 }
   0x9   :  { %1369 = vmatprep.mubr.msk.f32.mxu0 %vm48_vm0, %v223_v19  ;;  %1368 = vmatpush3.msra.mxu0 %v225_v18  ;;  %v1298_v33 = vld [vmem:[%s1665_s8] ss:$0 sm:$0xff] }
   0xa   :  { %1370 = vmatmul.mubr.msk.f32.vlgmr.msra.gmra.mrb[2].mxu0 %vm48_vm0, %v224_v20  ;;  %1377 = vmatprep.subr.mxu0 %v1451_v6  ;;  %v476_v53 = vld [vmem:[%s1666_s9] sm:$0xf] }
   0xb   :  { %1379 = vmatprep.mubr.msk.f32.mxu0 %vm1452_vm1, %v1451_v6  ;;  %v1312_v62 = vld [vmem:[%s1667_s10] ss:$0 sm:$0xff] }
  0xd8   :  { %v1366_v9 = vpop.f32.mrb[0].mxu1 }
  0xd9   :  { %v1361_v10 = vpop.f32.mrb[0].mxu0  ;;  %v1545_v11 = vadd.f32 %v1366_v9, %v1295_v7  ;;  %v214_v13 = vpop.f32.mrb[1].mxu1 }
  0xda   :  { %v127_v12 = vadd.f32 %v1361_v10, %v1292_v8  ;;  %v121_v14 = vpop.f32.mrb[1].mxu0  ;;  %v215_v15 = vadd.f32 %v1295_v7, %v214_v13 }
  0xdb   :  { %v122_v16 = vadd.f32 %v1292_v8, %v121_v14 }
  0xdc   :  { %479 = vrot.lane.b32.xlu0 %v215_v15, %s1453_s29  ;;  %1373 = vmatpush3.xpose.msk.msra.mxu1 %vm315_vm2, %v215_v15  ;;  %v131_v44 = vmul.f32 0.5, %v127_v12 }
  0xdd   :  { %v130_v17 = vmul.f32 0.5, %v122_v16  ;;  %1382 = vmatprep.subr.mxu1 %v1451_v6  ;;  %v1371_v32 = vpop.f32.mrb[2].mxu0 }
  0xde   :  { %v305_v34 = vpop.f32.mrb[3].mxu0  ;;  %v1578_v35 = vadd.f32 %v1371_v32, %v1298_v33 }
  0xdf   :  { %1375 = vmatmul.mubr.msk.f32.vlgmr.msra.gmra.mrb[2].mxu1 %vm315_vm2, %v130_v17  ;;  %v306_v36 = vadd.f32 %v1298_v33, %v305_v34 }
  0xe0   :  { %477 = vrot.lane.b32.xlu0 %v130_v17, %s1453_s29  ;;  %1384 = vmatprep.mubr.msk.f32.mxu1 %vm1452_vm1, %v1451_v6 }
  0xe1   :  { %1378 = vmatpush3.msra.mxu0 %v306_v36 }
  0xe2   :  { %1387 = vmatprep.subr.mxu0 %v1451_v6 }
 0x14e   :  { %v480_v21 = vpop.permute.xlu0 %479 }
 0x14f   :  { %1383 = vmatpush3.xpose.msk.msra.mxu1 %vm315_vm2, %v480_v21 }
 0x150   :  { %1392 = vmatprep.subr.mxu1 %v1451_v6 }
 0x152   :  { %v478_v22 = vpop.permute.xlu0 %477 }
 0x153   :  { %1385 = vmatmul.mubr.msk.f32.vlgmr.msra.gmra.mrb[4].mxu1 %vm315_vm2, %v478_v22 }
 0x154   :  { %1394 = vmatprep.mubr.msk.f32.mxu1 %vm1452_vm1, %v1451_v6  ;;  %1393 = vmatpush3.msk.msra.mxu1 %vm648_vm3, %v1307_v48 }
 0x155   :  { %1402 = vmatprep.subr.mxu1 %v1451_v6 }
 0x1b2   :  { %v388_v23 = vpop.f32.mrb[2].mxu1 }
 0x1b3   :  { %v1376_v24 = vpop.f32.mrb[3].mxu1  ;;  %v392_v25 = vsel %vm48_vm0, %v388_v23, -inf }
 0x1b4   :  { %393 = vmax.xlane.f32.xlu1 %v392_v25 }
 0x226   :  { %v551_v26 = vpop.f32.mrb[4].mxu1 }
 0x227   :  { %v1386_v27 = vpop.f32.mrb[5].mxu1  ;;  %v555_v28 = vsel %vm48_vm0, %v551_v26, -inf }
 0x228   :  { %556 = vmax.xlane.f32.xlu1 %v555_v28  ;;  %v966_v27 = vld [vmem:[%s1666_s9] sm:$0xf]  ;;  %v1319_v28 = vld [vmem:[%s1666_s9 + $0x4] sm:$0xf] }
 0x241   :  { %v394_v29 = vpop.xlane.xlu1 %393 }
 0x242   :  { %v395_v30 = vsub.f32 %v388_v23, %v394_v29 }
 0x244   :  { %v396_v31 = vmul.f32 1.442695, %v395_v30 }
 0x246   :  { %1435 = vpow2.f32 %v396_v31 }
 0x250   :  { %v1436_v37 = vpop.eup %1435 }
 0x251   :  { %v398_v38 = vsel %vm48_vm0, %v1436_v37, 0.0 }
 0x252   :  { %399 = vadd.xlane.f32.xlu0 %v398_v38 }
 0x2b5   :  { %v557_v39 = vpop.xlane.xlu1 %556 }
 0x2b6   :  { %v558_v40 = vsub.f32 %v551_v26, %v557_v39 }
 0x2b8   :  { %v559_v41 = vmul.f32 1.442695, %v558_v40 }
 0x2ba   :  { %1437 = vpow2.f32 %v559_v41 }
 0x2c4   :  { %v1438_v42 = vpop.eup %1437 }
 0x2c5   :  { %v561_v43 = vsel %vm48_vm0, %v1438_v42, 0.0 }
 0x2c6   :  { %562 = vadd.xlane.f32.xlu1 %v561_v43 }
 0x2d7   :  { %567 = vrot.lane.b32.xlu1 %v306_v36, %s1453_s29 }
 0x2db   :  { %969 = vrot.lane.b32.xlu1 %v1545_v11, %s1453_s29 }
 0x2df   :  { %v400_v45 = vpop.xlane.xlu0 %399  ;;  %967 = vrot.lane.b32.xlu1 %v131_v44, %s1453_s29 }
 0x2e0   :  { %1439 = vrcp.f32 %v400_v45 }
 0x2ea   :  { %v1440_v46 = vpop.eup %1439 }
 0x2eb   :  { %v402_v47 = vmul.f32 %v1440_v46, %v1436_v37 }
 0x2ed   :  { %1380 = vmatmul.mubr.msk.f32.vlgmr.msra.gmra.mrb[4].mxu0 %vm48_vm0, %v402_v47 }
 0x2ee   :  { %1389 = vmatprep.mubr.msk.f32.mxu0 %vm1452_vm1, %v1451_v6 }
 0x353   :  { %v563_v49 = vpop.xlane.xlu1 %562 }
 0x354   :  { %1441 = vrcp.f32 %v563_v49 }
 0x357   :  { %v568_v50 = vpop.permute.xlu1 %567 }
 0x358   :  { %1388 = vmatpush3.msra.mxu0 %v568_v50 }
 0x359   :  { %1397 = vmatprep.subr.mxu0 %v1451_v6 }
 0x35b   :  { %v970_v58 = vpop.permute.xlu1 %969 }
 0x35e   :  { %v1442_v51 = vpop.eup %1441 }
 0x35f   :  { %v565_v52 = vmul.f32 %v1442_v51, %v1438_v42  ;;  %v968_v59 = vpop.permute.xlu1 %967 }
 0x361   :  { %1390 = vmatmul.mubr.msk.f32.vlgmr.msra.gmra.mrb[6].mxu0 %vm48_vm0, %v565_v52 }
 0x362   :  { %1398 = vmatpush3.msk.msra.mxu0 %vm648_vm3, %v476_v53  ;;  %1399 = vmatprep.mubr.msk.f32.mxu0 %vm1452_vm1, %v1451_v6 }
 0x363   :  { %1407 = vmatprep.subr.mxu0 %v1451_v6 }
 0x3c0   :  { %v472_v54 = vpop.f32.mrb[4].mxu0 }
 0x3c1   :  { %v1381_v55 = vpop.f32.mrb[5].mxu0  ;;  %1400 = vmatmul.mubr.msk.f32.vlgmr.msra.gmra.mrb[8].mxu0 %vm315_vm2, %v472_v54 }
 0x3c2   :  { %1408 = vmatpush3.msra.mxu0 %v1578_v35  ;;  %1409 = vmatprep.mubr.msk.f32.mxu0 %vm1452_vm1, %v1451_v6 }
 0x3c3   :  { %1417 = vmatprep.subr.mxu0 %v1451_v6 }
 0x434   :  { %v639_v56 = vpop.f32.mrb[6].mxu0 }
 0x435   :  { %v1391_v57 = vpop.f32.mrb[7].mxu0  ;;  %1395 = vmatmul.mubr.msk.f32.vlgmr.msra.gmra.mrb[6].mxu1 %vm315_vm2, %v639_v56 }
 0x436   :  { %1403 = vmatpush3.xpose.msk.msra.mxu1 %vm315_vm2, %v1545_v11  ;;  %1404 = vmatprep.mubr.msk.f32.mxu1 %vm1452_vm1, %v1451_v6 }
 0x437   :  { %1412 = vmatprep.subr.mxu1 %v1451_v6 }
 0x439   :  { %1405 = vmatmul.mubr.msk.f32.vlgmr.msra.gmra.mrb[8].mxu1 %vm315_vm2, %v131_v44 }
 0x43a   :  { %1413 = vmatpush3.xpose.msk.msra.mxu1 %vm315_vm2, %v970_v58  ;;  %1414 = vmatprep.mubr.msk.f32.mxu1 %vm1452_vm1, %v1451_v6 }
 0x43b   :  { %1422 = vmatprep.subr.mxu1 %v1451_v6 }
 0x43d   :  { %1415 = vmatmul.mubr.msk.f32.vlgmr.msra.gmra.mrb[10].mxu1 %vm315_vm2, %v968_v59 }
 0x43e   :  { %1424 = vmatprep.mubr.msk.f32.mxu1 %vm1452_vm1, %v1451_v6  ;;  %1423 = vmatpush3.msk.msra.mxu1 %vm648_vm3, %v1319_v28 }
 0x494   :  { %v794_v60 = vpop.f32.mrb[8].mxu0 }
 0x495   :  { %v1401_v61 = vpop.f32.mrb[9].mxu0 }
 0x508   :  { %v718_v63 = vpop.f32.mrb[6].mxu1 }
 0x509   :  { %v795_v0 = vadd.f32 %v794_v60, %v718_v63  ;;  %v1396_v1 = vpop.f32.mrb[7].mxu1 }
 0x50b   :  { %v804_v2 = vadd.f32 %v1312_v62, %v795_v0 }
 0x50c   :  { %v878_v3 = vpop.f32.mrb[8].mxu1 }
 0x50d   :  { %805 = vst.msk [vmem:[%s1668_s11] sm:$0xff] %vm48_vm0, %v804_v2  ;;  %v1406_v4 = vpop.f32.mrb[9].mxu1  ;;  %v882_v5 = vsel %vm48_vm0, %v878_v3, -inf }
 0x50e   :  { %883 = vmax.xlane.f32.xlu1 %v882_v5 }
 0x510   :  { %v1041_v7 = vpop.f32.mrb[10].mxu1 }
 0x511   :  { %v1416_v8 = vpop.f32.mrb[11].mxu1  ;;  %v1045_v9 = vsel %vm48_vm0, %v1041_v7, -inf }
 0x512   :  { %1046 = vmax.xlane.f32.xlu0 %v1045_v9 }
 0x59b   :  { %v884_v10 = vpop.xlane.xlu1 %883 }
 0x59c   :  { %v885_v11 = vsub.f32 %v878_v3, %v884_v10 }
 0x59e   :  { %v886_v12 = vmul.f32 1.442695, %v885_v11 }
 0x59f   :  { %v1047_v13 = vpop.xlane.xlu0 %1046 }
 0x5a0   :  { %1443 = vpow2.f32 %v886_v12  ;;  %v1048_v14 = vsub.f32 %v1041_v7, %v1047_v13 }
 0x5a2   :  { %v1049_v15 = vmul.f32 1.442695, %v1048_v14 }
 0x5a4   :  { %1445 = vpow2.f32 %v1049_v15 }
 0x5aa   :  { %v1444_v16 = vpop.eup %1443 }
 0x5ab   :  { %v888_v17 = vsel %vm48_vm0, %v1444_v16, 0.0 }
 0x5ac   :  { %889 = vadd.xlane.f32.xlu0 %v888_v17 }
 0x5ae   :  { %v1446_v18 = vpop.eup %1445 }
 0x5af   :  { %v1051_v19 = vsel %vm48_vm0, %v1446_v18, 0.0 }
 0x5b0   :  { %1052 = vadd.xlane.f32.xlu0 %v1051_v19 }
 0x5c6   :  { %1057 = vrot.lane.b32.xlu0 %v1578_v35, %s1453_s29 }
 0x639   :  { %v890_v20 = vpop.xlane.xlu0 %889 }
 0x63a   :  { %1447 = vrcp.f32 %v890_v20 }
 0x63d   :  { %v1053_v21 = vpop.xlane.xlu0 %1052 }
 0x63e   :  { %1449 = vrcp.f32 %v1053_v21 }
 0x641   :  { %v1058_v24 = vpop.permute.xlu0 %1057 }
 0x644   :  { %v1448_v22 = vpop.eup %1447 }
 0x645   :  { %v892_v23 = vmul.f32 %v1448_v22, %v1444_v16 }
 0x647   :  { %1410 = vmatmul.mubr.msk.f32.vlgmr.msra.gmra.mrb[10].mxu0 %vm48_vm0, %v892_v23 }
 0x648   :  { %v1450_v25 = vpop.eup %1449  ;;  %1418 = vmatpush3.msra.mxu0 %v1058_v24  ;;  %1419 = vmatprep.mubr.msk.f32.mxu0 %vm1452_vm1, %v1451_v6 }
 0x649   :  { %v1055_v26 = vmul.f32 %v1450_v25, %v1446_v18  ;;  %1427 = vmatprep.subr.mxu0 %v1451_v6 }
 0x64b   :  { %1420 = vmatmul.mubr.msk.f32.vlgmr.msra.gmra.mrb[12].mxu0 %vm48_vm0, %v1055_v26 }
 0x64c   :  { %1429 = vmatprep.mubr.msk.f32.mxu0 %vm1452_vm1, %v1451_v6  ;;  %1428 = vmatpush3.msk.msra.mxu0 %vm648_vm3, %v966_v27 }
 0x71a   :  { %v962_v29 = vpop.f32.mrb[10].mxu0 }
 0x71b   :  { %v1411_v30 = vpop.f32.mrb[11].mxu0  ;;  %1430 = vmatmul.mubr.msk.f32.vlgmr.msra.gmra.mrb[14].mxu0 %vm315_vm2, %v962_v29 }
 0x71e   :  { %v1129_v31 = vpop.f32.mrb[12].mxu0 }
 0x71f   :  { %v1421_v32 = vpop.f32.mrb[13].mxu0  ;;  %1425 = vmatmul.mubr.msk.f32.vlgmr.msra.gmra.mrb[12].mxu1 %vm315_vm2, %v1129_v31 }
 0x7ee   :  { %v1282_v6 = vpop.f32.mrb[14].mxu0 }
 0x7ef   :  { %v1431_v33 = vpop.f32.mrb[15].mxu0 }
 0x7f2   :  { %v1206_v34 = vpop.f32.mrb[12].mxu1 }
 0x7f3   :  { %v1283_v35 = vadd.f32 %v1282_v6, %v1206_v34  ;;  %v1426_v36 = vpop.f32.mrb[13].mxu1 }
 0x7f5   :  { %v1286_v37 = vadd.f32 %v1312_v62, %v1283_v35 }
 0x7f7   :  { %1287 = vst.msk [vmem:[%s1668_s11 + $0x8] sm:$0xff] %vm48_vm0, %v1286_v37 }

</bundles_post_ra>
